<compile_context>
chip_gen: v5e
topology: v5e:2x2
jax: 0.10.0
libtpu: 0.0.40
codegen_flags: <defaults>
</compile_context>

<pallas_src>
import functools

import jax
import jax.numpy as jnp
from jax import lax
from jax.experimental import pallas as pl
from jax.experimental.pallas import tpu as pltpu

N_CLASSES = 10
PADDED_CLASSES = 16    # smallest convenient pad of the class axis (10 -> 16)
D_IN = 784
HIDDEN = 64


def _round_up(a, m):
    return ((a + m - 1) // m) * m


def mlp_logsoftmax_kernel(
    x_ref, w1_ref, b1_ref, w2_ref, b2_ref, w3_ref, b3_ref, w4_ref, b4_ref,
    o_ref,
):
    """Fused 4-layer MLP + ReLU + log_softmax for one batch tile.

    x arrives f32 and is cast to bf16 in-kernel; all matmuls accumulate in
    f32; bias add, ReLU and the log_softmax epilogue run in f32.
    """
    x = x_ref[...].astype(jnp.bfloat16)                               # in-kernel cast

    h = jnp.dot(x, w1_ref[...], preferred_element_type=jnp.float32) + b1_ref[...]
    h = jnp.maximum(h, 0.0).astype(jnp.bfloat16)

    h = jnp.dot(h, w2_ref[...], preferred_element_type=jnp.float32) + b2_ref[...]
    h = jnp.maximum(h, 0.0).astype(jnp.bfloat16)

    h = jnp.dot(h, w3_ref[...], preferred_element_type=jnp.float32) + b3_ref[...]
    h = jnp.maximum(h, 0.0).astype(jnp.bfloat16)

    # Final layer: class axis padded 10 -> 16 with zero weights/biases.
    logits = jnp.dot(h, w4_ref[...], preferred_element_type=jnp.float32) + b4_ref[...]

    # Explicit lane mask for the padded classes (robust to dtype changes).
    col = lax.broadcasted_iota(jnp.int32, logits.shape, 1)
    logits = jnp.where(col < N_CLASSES, logits, jnp.finfo(jnp.float32).min)

    # log_softmax over the class axis (dim=1 in the PyTorch module).
    m = jnp.max(logits, axis=-1, keepdims=True)
    shifted = logits - m
    lse = jnp.log(jnp.sum(jnp.exp(shifted), axis=-1, keepdims=True))
    o_ref[...] = (shifted - lse).astype(o_ref.dtype)


@functools.partial(jax.jit, static_argnames=("tile_b",))
def net_forward(x, params, tile_b=1024):
    """x: (B, 784) float32.  params: dict of (in,out) weights and (1,out) biases."""
    B, d_in = x.shape
    assert d_in == D_IN

    # Effective batch tile: don't over-pad small batches; f32 sublane packing
    # only needs a multiple of 8.
    eff_tile = min(_round_up(tile_b, 8), _round_up(B, 8))
    # v7x megacore: ensure the "parallel" grid axis has >= 2 steps for large
    # batches so both TensorCores participate.
    if B >= 2048:
        eff_tile = min(eff_tile, _round_up((B + 1) // 2, 8))

    b_pad = _round_up(B, eff_tile)
    if b_pad != B:
        # Zero-pad the batch (rows sliced off at the end). x stays f32 -- the
        # bf16 cast happens inside the kernel, so there is no extra HBM pass.
        x = jnp.pad(x, ((0, b_pad - B), (0, 0)))

    # Weights are tiny (~59K params): casting them to bf16 here is negligible.
    w1 = params["w1"].astype(jnp.bfloat16)
    w2 = params["w2"].astype(jnp.bfloat16)
    w3 = params["w3"].astype(jnp.bfloat16)
    b1 = params["b1"].astype(jnp.float32)
    b2 = params["b2"].astype(jnp.float32)
    b3 = params["b3"].astype(jnp.float32)

    # Pad the class axis 10 -> 16 with zeros; padded lanes are masked in-kernel.
    pad_n = PADDED_CLASSES - N_CLASSES
    w4 = jnp.pad(params["w4"], ((0, 0), (0, pad_n))).astype(jnp.bfloat16)
    b4 = jnp.pad(params["b4"].astype(jnp.float32), ((0, 0), (0, pad_n)))

    # Weights/biases: full-array blocks with a constant index_map -> Mosaic
    # keeps them VMEM-resident across the batch grid (no per-step re-DMA).
    def resident_spec(shape):
        return pl.BlockSpec(shape, lambda i: (0, 0))

    in_specs = [
        pl.BlockSpec((eff_tile, D_IN), lambda i: (i, 0)),   # x batch tile (pipelined)
        resident_spec(w1.shape), resident_spec(b1.shape),
        resident_spec(w2.shape), resident_spec(b2.shape),
        resident_spec(w3.shape), resident_spec(b3.shape),
        resident_spec(w4.shape), resident_spec(b4.shape),
    ]

    flops = 2 * b_pad * (D_IN * HIDDEN + HIDDEN * HIDDEN * 2 + HIDDEN * PADDED_CLASSES)
    bytes_accessed = (
        b_pad * D_IN * 4                                                        # x (f32)
        + (D_IN * HIDDEN + 2 * HIDDEN * HIDDEN + HIDDEN * PADDED_CLASSES) * 2   # weights (bf16)
        + (3 * HIDDEN + PADDED_CLASSES) * 4                                     # biases (f32)
        + b_pad * PADDED_CLASSES * 4                                            # output (f32)
    )
    cost = pl.CostEstimate(
        flops=flops,
        transcendentals=b_pad * (PADDED_CLASSES + 1),       # exp + log in the softmax
        bytes_accessed=bytes_accessed,
    )

    out = pl.pallas_call(
        mlp_logsoftmax_kernel,
        out_shape=jax.ShapeDtypeStruct((b_pad, PADDED_CLASSES), jnp.float32),
        grid_spec=pltpu.PrefetchScalarGridSpec(
            num_scalar_prefetch=0,
            grid=(b_pad // eff_tile,),
            in_specs=in_specs,
            out_specs=pl.BlockSpec((eff_tile, PADDED_CLASSES), lambda i: (i, 0)),
        ),
        compiler_params=pltpu.CompilerParams(
            dimension_semantics=("parallel",),
        ),
        cost_estimate=cost,
    )(x, w1, b1, w2, b2, w3, b3, w4, b4)

    return out[:B, :N_CLASSES]


def init_params(key):
    """Deterministic synthetic parameters matching nn.Linear shapes.
    Stored as (in, out) -- transpose of PyTorch's (out, in) convention."""
    dims = [(D_IN, HIDDEN), (HIDDEN, HIDDEN), (HIDDEN, HIDDEN), (HIDDEN, N_CLASSES)]
    params = {}
    keys = jax.random.split(key, 2 * len(dims))
    for idx, (d_in, d_out) in enumerate(dims):
        bound = 1.0 / jnp.sqrt(d_in)  # PyTorch default uniform(-1/sqrt(in), 1/sqrt(in))
        w = jax.random.uniform(keys[2 * idx], (d_in, d_out),
                               minval=-bound, maxval=bound, dtype=jnp.float32)
        b = jax.random.uniform(keys[2 * idx + 1], (1, d_out),
                               minval=-bound, maxval=bound, dtype=jnp.float32)
        params[f"w{idx + 1}"] = w
        params[f"b{idx + 1}"] = b
    return params


def net_forward_ref(x, params):
    """Pure-JAX f32 reference (matches the PyTorch module exactly)."""
    h = x
    for i in (1, 2, 3):
        h = jnp.maximum(h @ params[f"w{i}"] + params[f"b{i}"], 0.0)
    logits = h @ params["w4"] + params["b4"]
    return jax.nn.log_softmax(logits, axis=1)


if __name__ == "__main__":
    key = jax.random.PRNGKey(0)
    k_param, k_x = jax.random.split(key)

    params = init_params(k_param)
    batch = 8                              # small demo batch
    x = jax.random.normal(k_x, (batch, D_IN), dtype=jnp.float32)

    out = net_forward(x, params)
    out = jax.block_until_ready(out)

    ref = net_forward_ref(x, params)
    assert out.shape == (batch, N_CLASSES)
    # Loosened tolerance vs. the f32 reference: activations/weights run through
    # the MXU in bf16 (accumulation stays f32).
    assert jnp.allclose(out, ref, atol=5e-2, rtol=5e-2), "mismatch vs reference"

    print("KERNEL_OK")
</pallas_src>

<mosaic_0001>
module attributes {stable_mosaic.version = 11 : i64} {
  func.func @mlp_logsoftmax_kernel(%arg0: i32, %arg1: memref<8x784xf32, #tpu.memory_space<vmem>>, %arg2: memref<784x64xbf16, #tpu.memory_space<vmem>>, %arg3: memref<1x64xf32, #tpu.memory_space<vmem>>, %arg4: memref<64x64xbf16, #tpu.memory_space<vmem>>, %arg5: memref<1x64xf32, #tpu.memory_space<vmem>>, %arg6: memref<64x64xbf16, #tpu.memory_space<vmem>>, %arg7: memref<1x64xf32, #tpu.memory_space<vmem>>, %arg8: memref<64x16xbf16, #tpu.memory_space<vmem>>, %arg9: memref<1x16xf32, #tpu.memory_space<vmem>>, %arg10: memref<8x16xf32, #tpu.memory_space<vmem>>) attributes {dimension_semantics = [#tpu.dimension_semantics<parallel>], iteration_bounds = array<i64: 1>, scalar_prefetch = 0 : i64, scratch_operands = 0 : i64, tpu.core_type = #tpu.core_type<tc>, window_params = [{transform_indices = @transform_0, window_bounds = array<i64: 8, 784>}, {pipeline_mode = #tpu.pipeline_mode<synchronous>, transform_indices = @transform_1, window_bounds = array<i64: 784, 64>}, {pipeline_mode = #tpu.pipeline_mode<synchronous>, transform_indices = @transform_2, window_bounds = array<i64: 1, 64>}, {pipeline_mode = #tpu.pipeline_mode<synchronous>, transform_indices = @transform_3, window_bounds = array<i64: 64, 64>}, {pipeline_mode = #tpu.pipeline_mode<synchronous>, transform_indices = @transform_4, window_bounds = array<i64: 1, 64>}, {pipeline_mode = #tpu.pipeline_mode<synchronous>, transform_indices = @transform_5, window_bounds = array<i64: 64, 64>}, {pipeline_mode = #tpu.pipeline_mode<synchronous>, transform_indices = @transform_6, window_bounds = array<i64: 1, 64>}, {pipeline_mode = #tpu.pipeline_mode<synchronous>, transform_indices = @transform_7, window_bounds = array<i64: 64, 16>}, {pipeline_mode = #tpu.pipeline_mode<synchronous>, transform_indices = @transform_8, window_bounds = array<i64: 1, 16>}, {transform_indices = @transform_9, window_bounds = array<i64: 8, 16>}]} {
    %c0 = arith.constant 0 : index
    %c0_0 = arith.constant 0 : index
    %0 = vector.load %arg1[%c0, %c0_0] : memref<8x784xf32, #tpu.memory_space<vmem>>, vector<8x784xf32>
    %1 = arith.truncf %0 : vector<8x784xf32> to vector<8x784xbf16>
    %c0_1 = arith.constant 0 : index
    %c0_2 = arith.constant 0 : index
    %2 = vector.load %arg2[%c0_1, %c0_2] : memref<784x64xbf16, #tpu.memory_space<vmem>>, vector<784x64xbf16>
    %cst = arith.constant dense<0.000000e+00> : vector<8x64xf32>
    %3 = tpu.matmul %1, %2, %cst {dimension_numbers = #tpu.dot_dimension_numbers<[1], [0], [0], [1], [0, 0, 1, 1], [], []>} : vector<8x784xbf16>, vector<784x64xbf16>, vector<8x64xf32> -> vector<8x64xf32>
    %c0_3 = arith.constant 0 : index
    %c0_4 = arith.constant 0 : index
    %4 = vector.load %arg3[%c0_3, %c0_4] : memref<1x64xf32, #tpu.memory_space<vmem>>, vector<1x64xf32>
    %5 = vector.broadcast %4 : vector<1x64xf32> to vector<8x64xf32>
    %6 = arith.addf %3, %5 : vector<8x64xf32>
    %cst_5 = arith.constant 0.000000e+00 : f32
    %7 = vector.broadcast %cst_5 : f32 to vector<8x64xf32>
    %8 = arith.maximumf %6, %7 : vector<8x64xf32>
    %9 = arith.truncf %8 : vector<8x64xf32> to vector<8x64xbf16>
    %c0_6 = arith.constant 0 : index
    %c0_7 = arith.constant 0 : index
    %10 = vector.load %arg4[%c0_6, %c0_7] : memref<64x64xbf16, #tpu.memory_space<vmem>>, vector<64x64xbf16>
    %cst_8 = arith.constant dense<0.000000e+00> : vector<8x64xf32>
    %11 = tpu.matmul %9, %10, %cst_8 {dimension_numbers = #tpu.dot_dimension_numbers<[1], [0], [0], [1], [0, 0, 1, 1], [], []>} : vector<8x64xbf16>, vector<64x64xbf16>, vector<8x64xf32> -> vector<8x64xf32>
    %c0_9 = arith.constant 0 : index
    %c0_10 = arith.constant 0 : index
    %12 = vector.load %arg5[%c0_9, %c0_10] : memref<1x64xf32, #tpu.memory_space<vmem>>, vector<1x64xf32>
    %13 = vector.broadcast %12 : vector<1x64xf32> to vector<8x64xf32>
    %14 = arith.addf %11, %13 : vector<8x64xf32>
    %cst_11 = arith.constant 0.000000e+00 : f32
    %15 = vector.broadcast %cst_11 : f32 to vector<8x64xf32>
    %16 = arith.maximumf %14, %15 : vector<8x64xf32>
    %17 = arith.truncf %16 : vector<8x64xf32> to vector<8x64xbf16>
    %c0_12 = arith.constant 0 : index
    %c0_13 = arith.constant 0 : index
    %18 = vector.load %arg6[%c0_12, %c0_13] : memref<64x64xbf16, #tpu.memory_space<vmem>>, vector<64x64xbf16>
    %cst_14 = arith.constant dense<0.000000e+00> : vector<8x64xf32>
    %19 = tpu.matmul %17, %18, %cst_14 {dimension_numbers = #tpu.dot_dimension_numbers<[1], [0], [0], [1], [0, 0, 1, 1], [], []>} : vector<8x64xbf16>, vector<64x64xbf16>, vector<8x64xf32> -> vector<8x64xf32>
    %c0_15 = arith.constant 0 : index
    %c0_16 = arith.constant 0 : index
    %20 = vector.load %arg7[%c0_15, %c0_16] : memref<1x64xf32, #tpu.memory_space<vmem>>, vector<1x64xf32>
    %21 = vector.broadcast %20 : vector<1x64xf32> to vector<8x64xf32>
    %22 = arith.addf %19, %21 : vector<8x64xf32>
    %cst_17 = arith.constant 0.000000e+00 : f32
    %23 = vector.broadcast %cst_17 : f32 to vector<8x64xf32>
    %24 = arith.maximumf %22, %23 : vector<8x64xf32>
    %25 = arith.truncf %24 : vector<8x64xf32> to vector<8x64xbf16>
    %c0_18 = arith.constant 0 : index
    %c0_19 = arith.constant 0 : index
    %26 = vector.load %arg8[%c0_18, %c0_19] : memref<64x16xbf16, #tpu.memory_space<vmem>>, vector<64x16xbf16>
    %cst_20 = arith.constant dense<0.000000e+00> : vector<8x16xf32>
    %27 = tpu.matmul %25, %26, %cst_20 {dimension_numbers = #tpu.dot_dimension_numbers<[1], [0], [0], [1], [0, 0, 1, 1], [], []>} : vector<8x64xbf16>, vector<64x16xbf16>, vector<8x16xf32> -> vector<8x16xf32>
    %c0_21 = arith.constant 0 : index
    %c0_22 = arith.constant 0 : index
    %28 = vector.load %arg9[%c0_21, %c0_22] : memref<1x16xf32, #tpu.memory_space<vmem>>, vector<1x16xf32>
    %29 = vector.broadcast %28 : vector<1x16xf32> to vector<8x16xf32>
    %30 = arith.addf %27, %29 : vector<8x16xf32>
    %31 = tpu.iota {dimensions = array<i32: 1>} : vector<8x16xi32>
    %c10_i32 = arith.constant 10 : i32
    %32 = vector.broadcast %c10_i32 : i32 to vector<8x16xi32>
    %33 = arith.cmpi slt, %31, %32 : vector<8x16xi32>
    %cst_23 = arith.constant -3.40282347E+38 : f32
    %34 = vector.broadcast %cst_23 : f32 to vector<8x16xf32>
    %35 = arith.select %33, %30, %34 : vector<8x16xi1>, vector<8x16xf32>
    %cst_24 = arith.constant dense<0xFF800000> : vector<8xf32>
    %36 = vector.multi_reduction <maximumf>, %35, %cst_24 [1] : vector<8x16xf32> to vector<8xf32>
    %37 = vector.shape_cast %36 : vector<8xf32> to vector<8x1xf32>
    %38 = vector.broadcast %37 : vector<8x1xf32> to vector<8x16xf32>
    %39 = arith.subf %35, %38 : vector<8x16xf32>
    %40 = math.exp %39 : vector<8x16xf32>
    %cst_25 = arith.constant dense<0.000000e+00> : vector<8xf32>
    %41 = vector.multi_reduction <add>, %40, %cst_25 [1] : vector<8x16xf32> to vector<8xf32>
    %42 = vector.shape_cast %41 : vector<8xf32> to vector<8x1xf32>
    %43 = math.log %42 : vector<8x1xf32>
    %44 = vector.broadcast %43 : vector<8x1xf32> to vector<8x16xf32>
    %45 = arith.subf %39, %44 : vector<8x16xf32>
    %c0_26 = arith.constant 0 : index
    %c0_27 = arith.constant 0 : index
    %46 = vector.load %arg10[%c0_26, %c0_27] : memref<8x16xf32, #tpu.memory_space<vmem>>, vector<8x16xf32>
    tpu.vector_store %arg10[%c0_26, %c0_27], %45 {strides = array<i32>} : memref<8x16xf32, #tpu.memory_space<vmem>>, vector<8x16xf32>,
    return
  }
  func.func @transform_0(%arg0: i32) -> (i32, i32) {
    %c0_i32 = arith.constant 0 : i32
    %c0_i32_0 = arith.constant 0 : i32
    return %arg0, %c0_i32 : i32, i32
  }
  func.func @transform_1(%arg0: i32) -> (i32, i32) {
    %c0_i32 = arith.constant 0 : i32
    %c0_i32_0 = arith.constant 0 : i32
    %c0_i32_1 = arith.constant 0 : i32
    return %c0_i32, %c0_i32_0 : i32, i32
  }
  func.func @transform_2(%arg0: i32) -> (i32, i32) {
    %c0_i32 = arith.constant 0 : i32
    %c0_i32_0 = arith.constant 0 : i32
    %c0_i32_1 = arith.constant 0 : i32
    return %c0_i32, %c0_i32_0 : i32, i32
  }
  func.func @transform_3(%arg0: i32) -> (i32, i32) {
    %c0_i32 = arith.constant 0 : i32
    %c0_i32_0 = arith.constant 0 : i32
    %c0_i32_1 = arith.constant 0 : i32
    return %c0_i32, %c0_i32_0 : i32, i32
  }
  func.func @transform_4(%arg0: i32) -> (i32, i32) {
    %c0_i32 = arith.constant 0 : i32
    %c0_i32_0 = arith.constant 0 : i32
    %c0_i32_1 = arith.constant 0 : i32
    return %c0_i32, %c0_i32_0 : i32, i32
  }
  func.func @transform_5(%arg0: i32) -> (i32, i32) {
    %c0_i32 = arith.constant 0 : i32
    %c0_i32_0 = arith.constant 0 : i32
    %c0_i32_1 = arith.constant 0 : i32
    return %c0_i32, %c0_i32_0 : i32, i32
  }
  func.func @transform_6(%arg0: i32) -> (i32, i32) {
    %c0_i32 = arith.constant 0 : i32
    %c0_i32_0 = arith.constant 0 : i32
    %c0_i32_1 = arith.constant 0 : i32
    return %c0_i32, %c0_i32_0 : i32, i32
  }
  func.func @transform_7(%arg0: i32) -> (i32, i32) {
    %c0_i32 = arith.constant 0 : i32
    %c0_i32_0 = arith.constant 0 : i32
    %c0_i32_1 = arith.constant 0 : i32
    return %c0_i32, %c0_i32_0 : i32, i32
  }
  func.func @transform_8(%arg0: i32) -> (i32, i32) {
    %c0_i32 = arith.constant 0 : i32
    %c0_i32_0 = arith.constant 0 : i32
    %c0_i32_1 = arith.constant 0 : i32
    return %c0_i32, %c0_i32_0 : i32, i32
  }
  func.func @transform_9(%arg0: i32) -> (i32, i32) {
    %c0_i32 = arith.constant 0 : i32
    %c0_i32_0 = arith.constant 0 : i32
    return %arg0, %c0_i32 : i32, i32
  }
}

</mosaic_0001>

<bundles_post_ra>
// kernel: net_forward.1
= control target key start
LH: loop header
LB: loop body
LE: loop exit
PB: predicated region body
PF: predicated region fallthrough
CT: control target
= control target key end

     0   :  { %s1356_s0 = inlined_call_operand.vmem [shape: f32[8,784], index: 0, kind: input, shape index: {}]   ;;  %s1357_s1 = inlined_call_operand.vmem [shape: bf16[784,64], index: 1, kind: input, shape index: {}]   ;;  %s1358_s2 = inlined_call_operand.vmem [shape: f32[1,64], index: 2, kind: input, shape index: {}]   ;;  %s1359_s3 = inlined_call_operand.vmem [shape: bf16[64,64], index: 3, kind: input, shape index: {}]   ;;  %s1360_s4 = inlined_call_operand.vmem [shape: f32[1,64], index: 4, kind: input, shape index: {}]   ;;  %s1361_s5 = inlined_call_operand.vmem [shape: bf16[64,64], index: 5, kind: input, shape index: {}]   ;;  %s1362_s6 = inlined_call_operand.vmem [shape: f32[1,64], index: 6, kind: input, shape index: {}]   ;;  %s1363_s7 = inlined_call_operand.vmem [shape: bf16[64,16], index: 7, kind: input, shape index: {}]   ;;  %s1364_s8 = inlined_call_operand.vmem [shape: f32[1,16], index: 8, kind: input, shape index: {}]   ;;  %s1365_s9 = inlined_call_operand.hbm [shape: f32[8,16], index: 9, kind: output, shape index: {}]  }
   0x1   :  { %v990_v0 = vld [vmem:[%s1357_s1 + $0x38] sm:$0xff]  ;;  %v989_v3 = vld [vmem:[%s1357_s1 + $0x30] sm:$0xff]  ;;  %v988_v8 = vld [vmem:[%s1357_s1 + $0x28] sm:$0xff] }
   0x2   :  { %v998_v1 = vld [vmem:[%s1357_s1 + $0x78] sm:$0xff]  ;;  %448 = vmatpush.bf16.msra.mxu0 %v990_v0  ;;  %v997_v4 = vld [vmem:[%s1357_s1 + $0x70] sm:$0xff]  ;;  %v996_v9 = vld [vmem:[%s1357_s1 + $0x68] sm:$0xff] }
   0x3   :  { %v1006_v2 = vld [vmem:[%s1357_s1 + $0xb8] sm:$0xff]  ;;  %461 = vmatpush.bf16.msra.mxu1 %v998_v1  ;;  %v1005_v5 = vld [vmem:[%s1357_s1 + $0xb0] sm:$0xff]  ;;  %v1004_v10 = vld [vmem:[%s1357_s1 + $0xa8] sm:$0xff] }
   0x4   :  { %474 = vmatpush.bf16.msra.mxu2 %v1006_v2  ;;  %v1014_v6 = vld [vmem:[%s1357_s1 + $0xf8] sm:$0xff]  ;;  %v1013_v7 = vld [vmem:[%s1357_s1 + $0xf0] sm:$0xff]  ;;  %v1012_v11 = vld [vmem:[%s1357_s1 + $0xe8] sm:$0xff] }
   0x5   :  { %487 = vmatpush.bf16.msra.mxu3 %v1014_v6  ;;  %v987_v12 = vld [vmem:[%s1357_s1 + $0x20] sm:$0xff]  ;;  %v986_v16 = vld [vmem:[%s1357_s1 + $0x18] sm:$0xff]  ;;  %v985_v20 = vld [vmem:[%s1357_s1 + $0x10] sm:$0xff] }
   0x6   :  { %449 = vmatpush.bf16.msra.mxu0 %v989_v3  ;;  %v995_v13 = vld [vmem:[%s1357_s1 + $0x60] sm:$0xff]  ;;  %v994_v17 = vld [vmem:[%s1357_s1 + $0x58] sm:$0xff]  ;;  %v993_v21 = vld [vmem:[%s1357_s1 + $0x50] sm:$0xff] }
   0x7   :  { %462 = vmatpush.bf16.msra.mxu1 %v997_v4  ;;  %v1003_v14 = vld [vmem:[%s1357_s1 + $0xa0] sm:$0xff]  ;;  %v1002_v18 = vld [vmem:[%s1357_s1 + $0x98] sm:$0xff] }
   0x8   :  { %475 = vmatpush.bf16.msra.mxu2 %v1005_v5  ;;  %v1011_v15 = vld [vmem:[%s1357_s1 + $0xe0] sm:$0xff]  ;;  %v1010_v19 = vld [vmem:[%s1357_s1 + $0xd8] sm:$0xff] }
   0x9   :  { %488 = vmatpush.bf16.msra.mxu3 %v1013_v7 }
   0xa   :  { %450 = vmatpush.bf16.msra.mxu0 %v988_v8 }
   0xb   :  { %463 = vmatpush.bf16.msra.mxu1 %v996_v9 }
   0xc   :  { %476 = vmatpush.bf16.msra.mxu2 %v1004_v10 }
   0xd   :  { %489 = vmatpush.bf16.msra.mxu3 %v1012_v11 }
   0xe   :  { %451 = vmatpush.bf16.msra.mxu0 %v987_v12 }
   0xf   :  { %464 = vmatpush.bf16.msra.mxu1 %v995_v13 }
  0x10   :  { %477 = vmatpush.bf16.msra.mxu2 %v1003_v14 }
  0x11   :  { %490 = vmatpush.bf16.msra.mxu3 %v1011_v15 }
  0x12   :  { %452 = vmatpush.bf16.msra.mxu0 %v986_v16 }
  0x13   :  { %465 = vmatpush.bf16.msra.mxu1 %v994_v17 }
  0x14   :  { %14 = vsyncpa [#allocation3], 0  ;;  %478 = vmatpush.bf16.msra.mxu2 %v1002_v18  ;;  %v1001_v22 = vld [vmem:[%s1357_s1 + $0x90] sm:$0xff]  ;;  %v984_v24 = vld [vmem:[%s1357_s1 + $0x8] sm:$0xff]  ;;  %vm444_vm0 = vcmask 130048   ;;  %vm577_vm1 = vcmask 523264  }
  0x15   :  { %491 = vmatpush.bf16.msra.mxu3 %v1010_v19  ;;  %v1009_v23 = vld [vmem:[%s1357_s1 + $0xd0] sm:$0xff]  ;;  %v992_v25 = vld [vmem:[%s1357_s1 + $0x48] sm:$0xff]  ;;  %v983_v27 = vld [vmem:[%s1357_s1] sm:$0xff] }
  0x16   :  { %453 = vmatpush.bf16.msra.mxu0 %v985_v20  ;;  %v1000_v26 = vld [vmem:[%s1357_s1 + $0x88] sm:$0xff]  ;;  %v991_v29 = vld [vmem:[%s1357_s1 + $0x40] sm:$0xff]  ;;  %v1022_v32 = vld [vmem:[%s1357_s1 + $0x138] sm:$0xff] }
  0x17   :  { %466 = vmatpush.bf16.msra.mxu1 %v993_v21  ;;  %v1008_v28 = vld [vmem:[%s1357_s1 + $0xc8] sm:$0xff]  ;;  %v34_v30 = vld [vmem:[%s1356_s0] sm:$0xff]  ;;  %v1030_v33 = vld [vmem:[%s1357_s1 + $0x178] sm:$0xff] }
  0x18   :  { %479 = vmatpush.bf16.msra.mxu2 %v1001_v22  ;;  %v35_v31 = vld [vmem:[%s1356_s0 + $0x8] sm:$0xff]  ;;  %v999_v34 = vld [vmem:[%s1357_s1 + $0x80] sm:$0xff]  ;;  %v36_v35 = vld [vmem:[%s1356_s0 + $0x10] sm:$0xff]  ;;  %v41_v36 = vpack.c.bf16 %v34_v30, %v34_v30 }
  0x19   :  { %492 = vmatpush.bf16.msra.mxu3 %v1009_v23  ;;  %v42_v37 = vpack.c.bf16 %v35_v31, %v35_v31  ;;  %v1007_v38 = vld [vmem:[%s1357_s1 + $0xc0] sm:$0xff]  ;;  %v37_v40 = vld [vmem:[%s1356_s0 + $0x18] sm:$0xff]  ;;  %v1021_v41 = vld [vmem:[%s1357_s1 + $0x130] sm:$0xff]  ;;  %v43_v43 = vpack.c.bf16 %v36_v35, %v36_v35 }
  0x1a   :  { %454 = vmatpush.bf16.msra.mxu0 %v984_v24  ;;  %v1031_v39 = vld [vmem:[%s1357_s1 + $0x180] sm:$0xff]  ;;  %v1029_v42 = vld [vmem:[%s1357_s1 + $0x170] sm:$0xff]  ;;  %v44_v44 = vpack.c.bf16 %v37_v40, %v37_v40  ;;  %v1020_v45 = vld [vmem:[%s1357_s1 + $0x128] sm:$0xff] }
  0x1b   :  { %467 = vmatpush.bf16.msra.mxu1 %v992_v25  ;;  %v1028_v46 = vld [vmem:[%s1357_s1 + $0x168] sm:$0xff]  ;;  %v1019_v47 = vld [vmem:[%s1357_s1 + $0x120] sm:$0xff]  ;;  %v1018_v49 = vld [vmem:[%s1357_s1 + $0x118] sm:$0xff] }
  0x1c   :  { %480 = vmatpush.bf16.msra.mxu2 %v1000_v26  ;;  %v1027_v48 = vld [vmem:[%s1357_s1 + $0x160] sm:$0xff]  ;;  %v1026_v50 = vld [vmem:[%s1357_s1 + $0x158] sm:$0xff]  ;;  %v40_v51 = vld [vmem:[%s1356_s0 + $0x30] sm:$0xff] }
  0x1d   :  { %493 = vmatpush.bf16.msra.mxu3 %v1008_v28  ;;  %v1017_v52 = vld [vmem:[%s1357_s1 + $0x110] sm:$0xff]  ;;  %v47_v54 = vpack.c.bf16 %v40_v51, %v40_v51  ;;  %v1016_v55 = vld [vmem:[%s1357_s1 + $0x108] sm:$0xff]  ;;  %v1015_v57 = vld [vmem:[%s1357_s1 + $0x100] sm:$0xff] }
  0x1e   :  { %455 = vmatpush.bf16.msra.mxu0 %v983_v27  ;;  %v1025_v53 = vld [vmem:[%s1357_s1 + $0x150] sm:$0xff]  ;;  %v1024_v56 = vld [vmem:[%s1357_s1 + $0x148] sm:$0xff]  ;;  %v1023_v58 = vld [vmem:[%s1357_s1 + $0x140] sm:$0xff] }
  0x1f   :  { %468 = vmatpush.bf16.msra.mxu1 %v991_v29  ;;  %v38_v59 = vld [vmem:[%s1356_s0 + $0x20] sm:$0xff]  ;;  %v39_v60 = vld [vmem:[%s1356_s0 + $0x28] sm:$0xff]  ;;  %v1035_v63 = vld [vmem:[%s1359_s3 + $0x18] sm:$0xff]  ;;  %s726_s0 = sshll.u32 %s1365_s9, 4  ;;  %s727_s0 = int_to_ptr.hbm [resolvable:$true] %s726_s0 }
  0x20   :  { %481 = vmatpush.bf16.msra.mxu2 %v999_v34  ;;  %v45_v61 = vpack.c.bf16 %v38_v59, %v38_v59  ;;  %v46_v62 = vpack.c.bf16 %v39_v60, %v39_v60  ;;  %v1034_v0 = vld [vmem:[%s1359_s3 + $0x10] sm:$0xff]  ;;  %v1033_v1 = vld [vmem:[%s1359_s3 + $0x8] sm:$0xff]  ;;  %v1032_v4 = vld [vmem:[%s1359_s3] sm:$0xff] }
  0x21   :  { %456 = vmatmul.bf16.vlgmr.msra.gmra.mxu0 %v41_v36  ;;  %494 = vmatpush.bf16.msra.mxu3 %v1007_v38  ;;  %v1039_v7 = vld [vmem:[%s1361_s5 + $0x18] sm:$0xff]  ;;  %v1038_v10 = vld [vmem:[%s1361_s5 + $0x10] sm:$0xff]  ;;  %v1045_v11 = vld [vmem:[%s1358_s2] ss:$0 sm:$0xff] }
  0x22   :  { %500 = vmatpush.bf16.msrb.mxu0 %v1022_v32  ;;  %469 = vmatmul.bf16.vlgmr.msra.gmra.mxu1 %v42_v37  ;;  %v1037_v12 = vld [vmem:[%s1361_s5 + $0x8] sm:$0xff]  ;;  %v1036_v30 = vld [vmem:[%s1361_s5] sm:$0xff]  ;;  %v1043_v31 = vld [vmem:[%s1363_s7 + $0x18] sm:$0xff] }
  0x23   :  { %513 = vmatpush.bf16.msrb.mxu1 %v1030_v33  ;;  %482 = vmatmul.bf16.vlgmr.msra.gmra.mxu2 %v43_v43  ;;  %v1042_v32 = vld [vmem:[%s1363_s7 + $0x10] sm:$0xff]  ;;  %v1041_v33 = vld [vmem:[%s1363_s7 + $0x8] sm:$0xff]  ;;  %v1046_v34 = vld [vmem:[%s1360_s4] ss:$0 sm:$0xff] }
  0x24   :  { %533 = vmatpush.bf16.msrb.mxu2 %v1031_v39  ;;  %495 = vmatmul.bf16.vlgmr.msra.gmra.mxu3 %v44_v44  ;;  %v1040_v40 = vld [vmem:[%s1363_s7] sm:$0xff] }
  0x25   :  { %585 = vmatpush.bf16.msrb.mxu3 %v1035_v63 }
  0x26   :  { %501 = vmatpush.bf16.msrb.mxu0 %v1021_v41  ;;  %v1047_v41 = vld [vmem:[%s1362_s6] ss:$0 sm:$0xff]  ;;  %s1079_s6 = smov [#allocation2]  }
  0x27   :  { %514 = vmatpush.bf16.msrb.mxu1 %v1029_v42  ;;  %s724_s7 = sshll.u32 %s1079_s6, 4  ;;  %s725_s7 = int_to_ptr.vmem [resolvable:$true] %s724_s7 }
  0x28   :  { %639 = vmatpush.bf16.msra.mxu2 %v1039_v7 }
  0x29   :  { %586 = vmatpush.bf16.msrb.mxu3 %v1034_v0 }
  0x2a   :  { %502 = vmatpush.bf16.msrb.mxu0 %v1020_v45 }
  0x2b   :  { %515 = vmatpush.bf16.msrb.mxu1 %v1028_v46 }
  0x2c   :  { %640 = vmatpush.bf16.msra.mxu2 %v1038_v10 }
  0x2d   :  { %587 = vmatpush.bf16.msrb.mxu3 %v1033_v1 }
  0x2e   :  { %503 = vmatpush.bf16.msrb.mxu0 %v1019_v47  ;;  %v702_v47 = vlaneseq }
  0x2f   :  { %516 = vmatpush.bf16.msrb.mxu1 %v1027_v48 }
  0x30   :  { %641 = vmatpush.bf16.msra.mxu2 %v1037_v12  ;;  %v703_v48 = vand.u32 127, %v702_v47 }
  0x31   :  { %588 = vmatpush.bf16.msrb.mxu3 %v1032_v4 }
  0x32   :  { %504 = vmatpush.bf16.msrb.mxu0 %v1018_v49  ;;  %v1048_v49 = vld [vmem:[%s1364_s8] ss:$0 sm:$0xff]  ;;  %vm704_vm2 = vcmp.lt.s32.totalorder %v703_v48, 10 }
  0x33   :  { %517 = vmatpush.bf16.msrb.mxu1 %v1026_v50  ;;  %931 = vmatmul.msk.bf16.vlgmr.msrb.gmra.mxu2 %vm444_vm0, %v47_v54 }
  0x34   :  { %642 = vmatpush.bf16.msra.mxu2 %v1036_v30 }
  0x35   :  { %693 = vmatpush.bf16.msra.mxu3 %v1043_v31 }
  0x36   :  { %505 = vmatpush.bf16.msrb.mxu0 %v1017_v52 }
  0x37   :  { %518 = vmatpush.bf16.msrb.mxu1 %v1025_v53 }
  0x39   :  { %694 = vmatpush.bf16.msra.mxu3 %v1042_v32 }
  0x3a   :  { %506 = vmatpush.bf16.msrb.mxu0 %v1016_v55 }
  0x3b   :  { %519 = vmatpush.bf16.msrb.mxu1 %v1024_v56 }
  0x3d   :  { %695 = vmatpush.bf16.msra.mxu3 %v1041_v33 }
  0x3e   :  { %507 = vmatpush.bf16.msrb.mxu0 %v1015_v57 }
  0x3f   :  { %520 = vmatpush.bf16.msrb.mxu1 %v1023_v58 }
  0x41   :  { %508 = vmatmul.bf16.vlgmr.msrb.gmra.mxu0 %v45_v61  ;;  %696 = vmatpush.bf16.msra.mxu3 %v1040_v40 }
  0x42   :  { %521 = vmatmul.bf16.vlgmr.msrb.gmra.mxu1 %v46_v62 }
  0x9e   :  { %v457_v2 = vpop.f32.mrf.mxu0 }
  0x9f   :  { %v470_v3 = vpop.f32.mrf.mxu1  ;;  %v458_v13 = vadd.f32 %v1045_v11, %v457_v2 }
  0xa1   :  { %v471_v16 = vadd.f32 %v470_v3, %v458_v13 }
  0xa6   :  { %v459_v5 = vpop.f32.mrf.mxu0  ;;  %v483_v8 = vpop.f32.mrf.mxu2 }
  0xa7   :  { %v472_v6 = vpop.f32.mrf.mxu1  ;;  %v496_v9 = vpop.f32.mrf.mxu3  ;;  %v484_v17 = vadd.f32 %v483_v8, %v471_v16 }
  0xa9   :  { %v497_v19 = vadd.f32 %v496_v9, %v484_v17 }
  0xae   :  { %v485_v14 = vpop.f32.mrf.mxu2 }
  0xaf   :  { %v498_v15 = vpop.f32.mrf.mxu3 }
  0xb6   :  { %v535_v18 = vpop.f32.mrf.mxu2 }
  0xbe   :  { %v509_v20 = vpop.f32.mrf.mxu0  ;;  %v537_v24 = vpop.f32.mrf.mxu2 }
  0xbf   :  { %v522_v21 = vpop.f32.mrf.mxu1  ;;  %v510_v22 = vadd.f32 %v509_v20, %v497_v19 }
  0xc1   :  { %v523_v23 = vadd.f32 %v522_v21, %v510_v22 }
  0xc3   :  { %v536_v25 = vadd.f32 %v535_v18, %v523_v23 }
  0xc5   :  { %v539_v26 = vmax.f32 %v536_v25, 0.0 }
  0xc6   :  { %v511_v27 = vpop.f32.mrf.mxu0 }
  0xc7   :  { %v524_v28 = vpop.f32.mrf.mxu1  ;;  %v540_v29 = vpack.c.bf16 %v539_v26, %v539_v26 }
  0xc9   :  { %948 = vmatmul.msk.bf16.vlgmr.msrb.gmra.mxu3 %vm577_vm1, %v540_v29 }
 0x14c   :  { %v590_v35 = vpop.f32.mrf.mxu3 }
 0x14d   :  { %v591_v36 = vadd.f32 %v1046_v34, %v590_v35 }
 0x14f   :  { %v594_v37 = vmax.f32 %v591_v36, 0.0 }
 0x151   :  { %v595_v38 = vpack.c.bf16 %v594_v37, %v594_v37 }
 0x153   :  { %965 = vmatmul.msk.bf16.vlgmr.msra.gmra.mxu2 %vm577_vm1, %v595_v38 }
 0x154   :  { %v592_v39 = vpop.f32.mrf.mxu3 }
 0x1d6   :  { %v644_v42 = vpop.f32.mrf.mxu2 }
 0x1d7   :  { %v645_v43 = vadd.f32 %v1047_v41, %v644_v42 }
 0x1d9   :  { %v648_v44 = vmax.f32 %v645_v43, 0.0 }
 0x1db   :  { %v649_v45 = vpack.c.bf16 %v648_v44, %v648_v44 }
 0x1dd   :  { %982 = vmatmul.msk.bf16.vlgmr.msra.gmra.mxu3 %vm577_vm1, %v649_v45 }
 0x1de   :  { %v646_v46 = vpop.f32.mrf.mxu2 }
 0x260   :  { %v698_v50 = vpop.f32.mrf.mxu3 }
 0x261   :  { %v699_v51 = vadd.f32 %v1048_v49, %v698_v50 }
 0x263   :  { %v705_v52 = vsel %vm704_vm2, %v699_v51, -3.4028235e+38 }
 0x264   :  { %v706_v53 = vsel %vm444_vm0, %v705_v52, -inf }
 0x265   :  { %707 = vmax.xlane.f32.xlu0 %v706_v53 }
 0x268   :  { %v700_v54 = vpop.f32.mrf.mxu3 }
 0x2d8   :  { %v708_v55 = vpop.xlane.xlu0 %707 }
 0x2d9   :  { %v709_v56 = vsub.f32 %v705_v52, %v708_v55 }
 0x2db   :  { %v710_v57 = vmul.f32 1.442695, %v709_v56 }
 0x2dd   :  { %1049 = vpow2.f32 %v710_v57 }
 0x2e3   :  { %v1050_v58 = vpop.eup %1049 }
 0x2e4   :  { %v712_v59 = vsel %vm444_vm0, %v1050_v58, 0.0 }
 0x2e5   :  { %713 = vadd.xlane.f32.xlu0 %v712_v59 }
 0x358   :  { %v714_v60 = vpop.xlane.xlu0 %713 }
 0x359   :  { %1051 = vlog2.f32 %v714_v60 }
 0x35f   :  { %v1052_v61 = vpop.eup %1051 }
 0x360   :  { %v716_v62 = vmul.f32 0.6931472, %v1052_v61 }
 0x362   :  { %v717_v63 = vsub.f32 %v709_v56, %v716_v62 }
 0x364   :  { %718 = vst.msk [vmem:[#allocation2] sm:$0xff] %vm444_vm0, %v717_v63 }
 0x365   :  { %729 = dma.vmem_to_hbm [thread:$0]  %s725_s7, 128, %s727_s0, [#allocation3]  }
 0x366   :  { %1077 = dma.done.wait [#allocation3], 128  }
 0x367   :  { %1078 = vsyncadd [#allocation3], 4294967168 }
 0x368   :  { %734 = vsyncpa [#allocation3], 1 }

</bundles_post_ra>
